<compile_context>
chip_gen: v6e
topology: v6e:2x2x1
jax: 0.10.0
libtpu: 0.0.40
codegen_flags: <defaults>
</compile_context>

<pallas_src>
import functools

import jax
import jax.numpy as jnp
import numpy as np
from jax.experimental import pallas as pl
from jax.experimental.pallas import tpu as pltpu

NEG_SLOPE = 0.01            # torch.nn.LeakyReLU default negative_slope
COMPUTE_DTYPE = jnp.bfloat16  # MXU input dtype; set to jnp.float32 for bit-closer parity


def _cnnblock_kernel(x_ref, w_ref, b_ref, o_ref, *, k, s):
    # x_ref: (B_blk, Hp, Wp*Cin)       padded NHWC images, (w, ci) flattened minor
    # w_ref: (k, Wp*Cin, OW*Cout)      banded weight slabs (resident across the grid)
    # b_ref: (1, OW*Cout)              bias tiled across width, f32 (resident)
    # o_ref: (B_blk, OH, OW*Cout)      lane-dense output rows (== row-major NHWC)
    b_blk, oh, owc = o_ref.shape
    wpcin = x_ref.shape[2]

    acc = jnp.zeros((b_blk * oh, owc), dtype=jnp.float32)

    if s == 1:
        # Load the tile once; LeakyReLU exactly once per element, in f32 (VPU).
        xa = x_ref[...].astype(jnp.float32)
        xa = jnp.where(xa >= 0, xa, xa * NEG_SLOPE)
        for kh in range(k):
            # Sublane-offset slice of an f32 tile (cheap); kw shift lives in w_ref[kh].
            slab = xa[:, kh:kh + oh, :].reshape(b_blk * oh, wpcin)
            acc += jnp.dot(slab.astype(w_ref.dtype), w_ref[kh],
                           preferred_element_type=jnp.float32)
    else:
        # Native stride: strided sublane read per kh slab.  Rows overlap by ceil(k/s)
        # so LeakyReLU is re-applied on the overlap — cheap, exact (applied to fresh
        # reads of the original data, never cumulatively).
        for kh in range(k):
            rows = x_ref[:, pl.ds(kh, oh, stride=s), :].astype(jnp.float32)
            rows = jnp.where(rows >= 0, rows, rows * NEG_SLOPE)
            slab = rows.reshape(b_blk * oh, wpcin)
            acc += jnp.dot(slab.astype(w_ref.dtype), w_ref[kh],
                           preferred_element_type=jnp.float32)

    out = acc + b_ref[...]
    o_ref[...] = out.reshape(b_blk, oh, owc).astype(o_ref.dtype)


@functools.partial(jax.jit, static_argnames=("k", "s", "p"))
def cnn_block_forward(x, weight, bias, *, k: int, s: int, p: int):
    """x: (N, Cin, H, W)  weight: (Cout, Cin, k, k)  bias: (Cout,)  -> (N, Cout, OH, OW)"""
    N, Cin, H, W = x.shape
    Cout = weight.shape[0]
    Hp, Wp = H + 2 * p, W + 2 * p
    OH = (Hp - k) // s + 1
    OW = (Wp - k) // s + 1

    # --- layout-only prep: NCHW -> NHWC, zero pad, flatten (W, Cin) minor, cast.
    # LeakyReLU(0) == 0, so padding with zeros *before* the in-kernel LeakyReLU is exact.
    x_nhwc = jnp.transpose(x, (0, 2, 3, 1))
    xp = jnp.pad(x_nhwc, ((0, 0), (p, p), (p, p), (0, 0)))
    x_flat = xp.reshape(N, Hp, Wp * Cin).astype(COMPUTE_DTYPE)

    # --- banded weight slabs (k of them), stride folded into the output columns:
    #   Wb[kh, wi*Cin+ci, ow*Cout+co] = weight[co, ci, kh, wi - ow*s]  if 0 <= wi-ow*s < k
    w_t = jnp.transpose(weight, (2, 3, 1, 0))                  # (kh, kw, Cin, Cout)
    wi = jnp.arange(Wp)[:, None]                               # (Wp, 1)
    ow = jnp.arange(OW)[None, :]                               # (1, OW)
    kw_idx = wi - ow * s                                       # (Wp, OW)
    valid = (kw_idx >= 0) & (kw_idx < k)
    kw_safe = jnp.clip(kw_idx, 0, k - 1)
    wb = w_t[:, kw_safe]                                       # (k, Wp, OW, Cin, Cout)
    wb = jnp.where(valid[None, :, :, None, None], wb, 0.0)
    w_banded = jnp.transpose(wb, (0, 1, 3, 2, 4)).reshape(
        k, Wp * Cin, OW * Cout).astype(COMPUTE_DTYPE)
    b_row = jnp.tile(bias, OW).reshape(1, OW * Cout).astype(jnp.float32)

    # --- images per grid step: fill the MXU M dim (target ~256 rows = B_blk*OH) while
    # keeping >= 2 "parallel" grid steps when N allows (both v7x TensorCores busy).
    target = max(1, 256 // max(OH, 1))
    divisors = [d for d in range(1, N + 1) if N % d == 0]
    cands = [d for d in divisors if d <= target and N // d >= 2]
    if not cands:
        cands = [d for d in divisors if d <= target] or [1]
    b_blk = max(cands)

    kernel = functools.partial(_cnnblock_kernel, k=k, s=s)

    out_flat = pl.pallas_call(
        kernel,
        out_shape=jax.ShapeDtypeStruct((N, OH, OW * Cout), x.dtype),
        grid_spec=pltpu.PrefetchScalarGridSpec(
            num_scalar_prefetch=0,
            grid=(N // b_blk,),
            in_specs=[
                pl.BlockSpec((b_blk, Hp, Wp * Cin), lambda b: (b, 0, 0)),   # images
                pl.BlockSpec((k, Wp * Cin, OW * Cout), lambda b: (0, 0, 0)),  # weights (resident)
                pl.BlockSpec((1, OW * Cout), lambda b: (0, 0)),             # bias (resident)
            ],
            out_specs=pl.BlockSpec((b_blk, OH, OW * Cout), lambda b: (b, 0, 0)),
        ),
        compiler_params=pltpu.CompilerParams(
            dimension_semantics=("parallel",)),
    )(x_flat, w_banded, b_row)

    # (N, OH, OW*Cout) row-major == NHWC; back to NCHW.
    return out_flat.reshape(N, OH, OW, Cout).transpose(0, 3, 1, 2)


def _reference(x, weight, bias, *, k, s, p):
    """Pure-JAX f32 reference: conv2d(leaky_relu(x)) in NCHW, matching PyTorch semantics."""
    xr = jnp.where(x >= 0, x, NEG_SLOPE * x)
    y = jax.lax.conv_general_dilated(
        xr.astype(jnp.float32), weight.astype(jnp.float32),
        window_strides=(s, s), padding=[(p, p), (p, p)],
        dimension_numbers=("NCHW", "OIHW", "NCHW"))
    return y + bias.reshape(1, -1, 1, 1)


if __name__ == "__main__":
    # Small shapes consistent with the module: batch=2, in_channels=4, out_channels=8,
    # spatial=16, kernel=3, stride=1, padding=1.
    N, Cin, Cout, H, W = 2, 4, 8, 16, 16
    k, s, p = 3, 1, 1

    key = jax.random.PRNGKey(0)
    kx, kw_, kb = jax.random.split(key, 3)

    x = jax.random.normal(kx, (N, Cin, H, W), dtype=jnp.float32)
    # Deterministic init mimicking nn.Conv2d default: U(-1/sqrt(fan_in), 1/sqrt(fan_in)).
    fan_in = Cin * k * k
    bound = 1.0 / np.sqrt(fan_in)
    weight = jax.random.uniform(kw_, (Cout, Cin, k, k), minval=-bound, maxval=bound,
                                dtype=jnp.float32)
    bias = jax.random.uniform(kb, (Cout,), minval=-bound, maxval=bound,
                              dtype=jnp.float32)

    out = jax.block_until_ready(cnn_block_forward(x, weight, bias, k=k, s=s, p=p))
    ref = jax.block_until_ready(_reference(x, weight, bias, k=k, s=s, p=p))

    # bf16 inputs / f32 accumulation vs. f32 reference -> loosened tolerance.
    np.testing.assert_allclose(np.asarray(out), np.asarray(ref), rtol=2e-2, atol=2e-2)

    print("KERNEL_OK")
</pallas_src>

<mosaic_0001>
module attributes {stable_mosaic.version = 11 : i64} {
  func.func @_cnnblock_kernel(%arg0: i32, %arg1: memref<1x18x72xbf16, #tpu.memory_space<vmem>>, %arg2: memref<3x72x128xbf16, #tpu.memory_space<vmem>>, %arg3: memref<1x128xf32, #tpu.memory_space<vmem>>, %arg4: memref<1x16x128xf32, #tpu.memory_space<vmem>>) attributes {dimension_semantics = [#tpu.dimension_semantics<parallel>], iteration_bounds = array<i64: 2>, scalar_prefetch = 0 : i64, scratch_operands = 0 : i64, tpu.core_type = #tpu.core_type<tc>, window_params = [{transform_indices = @transform_0, window_bounds = array<i64: 1, 18, 72>}, {pipeline_mode = #tpu.pipeline_mode<synchronous>, transform_indices = @transform_1, window_bounds = array<i64: 3, 72, 128>}, {pipeline_mode = #tpu.pipeline_mode<synchronous>, transform_indices = @transform_2, window_bounds = array<i64: 1, 128>}, {transform_indices = @transform_3, window_bounds = array<i64: 1, 16, 128>}]} {
    %cst = arith.constant 0.000000e+00 : f32
    %0 = vector.broadcast %cst : f32 to vector<16x128xf32>
    %c0 = arith.constant 0 : index
    %c0_0 = arith.constant 0 : index
    %c0_1 = arith.constant 0 : index
    %1 = vector.load %arg1[%c0, %c0_0, %c0_1] : memref<1x18x72xbf16, #tpu.memory_space<vmem>>, vector<1x18x72xbf16>
    %2 = arith.extf %1 : vector<1x18x72xbf16> to vector<1x18x72xf32>
    %cst_2 = arith.constant 0.000000e+00 : f32
    %3 = vector.broadcast %cst_2 : f32 to vector<1x18x72xf32>
    %4 = arith.cmpf oge, %2, %3 : vector<1x18x72xf32>
    %cst_3 = arith.constant 0.00999999977 : f32
    %5 = vector.broadcast %cst_3 : f32 to vector<1x18x72xf32>
    %6 = arith.mulf %2, %5 : vector<1x18x72xf32>
    %7 = arith.select %4, %2, %6 : vector<1x18x72xi1>, vector<1x18x72xf32>
    %8 = vector.extract_strided_slice %7 {offsets = [0, 0, 0], sizes = [1, 16, 72], strides = [1, 1, 1]} : vector<1x18x72xf32> to vector<1x16x72xf32>
    %9 = vector.shape_cast %8 : vector<1x16x72xf32> to vector<16x72xf32>
    %10 = arith.truncf %9 : vector<16x72xf32> to vector<16x72xbf16>
    %c0_4 = arith.constant 0 : index
    %c0_5 = arith.constant 0 : index
    %c0_6 = arith.constant 0 : index
    %11 = vector.load %arg2[%c0_4, %c0_5, %c0_6] : memref<3x72x128xbf16, #tpu.memory_space<vmem>>, vector<1x72x128xbf16>
    %12 = vector.shape_cast %11 : vector<1x72x128xbf16> to vector<72x128xbf16>
    %cst_7 = arith.constant dense<0.000000e+00> : vector<16x128xf32>
    %13 = tpu.matmul %10, %12, %cst_7 {dimension_numbers = #tpu.dot_dimension_numbers<[1], [0], [0], [1], [0, 0, 1, 1], [], []>} : vector<16x72xbf16>, vector<72x128xbf16>, vector<16x128xf32> -> vector<16x128xf32>
    %14 = arith.addf %0, %13 : vector<16x128xf32>
    %15 = vector.extract_strided_slice %7 {offsets = [0, 1, 0], sizes = [1, 16, 72], strides = [1, 1, 1]} : vector<1x18x72xf32> to vector<1x16x72xf32>
    %16 = vector.shape_cast %15 : vector<1x16x72xf32> to vector<16x72xf32>
    %17 = arith.truncf %16 : vector<16x72xf32> to vector<16x72xbf16>
    %c1 = arith.constant 1 : index
    %c0_8 = arith.constant 0 : index
    %c0_9 = arith.constant 0 : index
    %18 = vector.load %arg2[%c1, %c0_8, %c0_9] : memref<3x72x128xbf16, #tpu.memory_space<vmem>>, vector<1x72x128xbf16>
    %19 = vector.shape_cast %18 : vector<1x72x128xbf16> to vector<72x128xbf16>
    %cst_10 = arith.constant dense<0.000000e+00> : vector<16x128xf32>
    %20 = tpu.matmul %17, %19, %cst_10 {dimension_numbers = #tpu.dot_dimension_numbers<[1], [0], [0], [1], [0, 0, 1, 1], [], []>} : vector<16x72xbf16>, vector<72x128xbf16>, vector<16x128xf32> -> vector<16x128xf32>
    %21 = arith.addf %14, %20 : vector<16x128xf32>
    %22 = vector.extract_strided_slice %7 {offsets = [0, 2, 0], sizes = [1, 16, 72], strides = [1, 1, 1]} : vector<1x18x72xf32> to vector<1x16x72xf32>
    %23 = vector.shape_cast %22 : vector<1x16x72xf32> to vector<16x72xf32>
    %24 = arith.truncf %23 : vector<16x72xf32> to vector<16x72xbf16>
    %c2 = arith.constant 2 : index
    %c0_11 = arith.constant 0 : index
    %c0_12 = arith.constant 0 : index
    %25 = vector.load %arg2[%c2, %c0_11, %c0_12] : memref<3x72x128xbf16, #tpu.memory_space<vmem>>, vector<1x72x128xbf16>
    %26 = vector.shape_cast %25 : vector<1x72x128xbf16> to vector<72x128xbf16>
    %cst_13 = arith.constant dense<0.000000e+00> : vector<16x128xf32>
    %27 = tpu.matmul %24, %26, %cst_13 {dimension_numbers = #tpu.dot_dimension_numbers<[1], [0], [0], [1], [0, 0, 1, 1], [], []>} : vector<16x72xbf16>, vector<72x128xbf16>, vector<16x128xf32> -> vector<16x128xf32>
    %28 = arith.addf %21, %27 : vector<16x128xf32>
    %c0_14 = arith.constant 0 : index
    %c0_15 = arith.constant 0 : index
    %29 = vector.load %arg3[%c0_14, %c0_15] : memref<1x128xf32, #tpu.memory_space<vmem>>, vector<1x128xf32>
    %30 = vector.broadcast %29 : vector<1x128xf32> to vector<16x128xf32>
    %31 = arith.addf %28, %30 : vector<16x128xf32>
    %32 = vector.shape_cast %31 : vector<16x128xf32> to vector<1x16x128xf32>
    %c0_16 = arith.constant 0 : index
    %c0_17 = arith.constant 0 : index
    %c0_18 = arith.constant 0 : index
    %33 = vector.load %arg4[%c0_16, %c0_17, %c0_18] : memref<1x16x128xf32, #tpu.memory_space<vmem>>, vector<1x16x128xf32>
    tpu.vector_store %arg4[%c0_16, %c0_17, %c0_18], %32 {strides = array<i32>} : memref<1x16x128xf32, #tpu.memory_space<vmem>>, vector<1x16x128xf32>,
    return
  }
  func.func @transform_0(%arg0: i32) -> (i32, i32, i32) {
    %c0_i32 = arith.constant 0 : i32
    %c0_i32_0 = arith.constant 0 : i32
    %c0_i32_1 = arith.constant 0 : i32
    return %arg0, %c0_i32, %c0_i32_0 : i32, i32, i32
  }
  func.func @transform_1(%arg0: i32) -> (i32, i32, i32) {
    %c0_i32 = arith.constant 0 : i32
    %c0_i32_0 = arith.constant 0 : i32
    %c0_i32_1 = arith.constant 0 : i32
    %c0_i32_2 = arith.constant 0 : i32
    return %c0_i32, %c0_i32_0, %c0_i32_1 : i32, i32, i32
  }
  func.func @transform_2(%arg0: i32) -> (i32, i32) {
    %c0_i32 = arith.constant 0 : i32
    %c0_i32_0 = arith.constant 0 : i32
    %c0_i32_1 = arith.constant 0 : i32
    return %c0_i32, %c0_i32_0 : i32, i32
  }
  func.func @transform_3(%arg0: i32) -> (i32, i32, i32) {
    %c0_i32 = arith.constant 0 : i32
    %c0_i32_0 = arith.constant 0 : i32
    %c0_i32_1 = arith.constant 0 : i32
    return %arg0, %c0_i32, %c0_i32_0 : i32, i32, i32
  }
}

</mosaic_0001>

<bundles_post_ra>
// kernel: tile.8
= control target key start
LH: loop header
LB: loop body
LE: loop exit
PB: predicated region body
PF: predicated region fallthrough
CT: control target
= control target key end

     0   :  { %s28_s0 = inlined_call_operand.vmem [shape: f32[8], index: 0, kind: input, shape index: {}]   ;;  %s29_s1 = inlined_call_operand.vmem [shape: f32[16,8], index: 1, kind: output, shape index: {}]  }
   0x1   :  { %v4_v0 = vld [vmem:[%s28_s0] ss:$0 sm:$0xff] }
   0x2   :  { %5 = vst [vmem:[%s29_s1] sm:$0xff] %v4_v0  ;;  %8 = vst [vmem:[%s29_s1 + $0x8] sm:$0xff] %v4_v0 }

// kernel: tile.9
= control target key start
LH: loop header
LB: loop body
LE: loop exit
PB: predicated region body
PF: predicated region fallthrough
CT: control target
= control target key end

     0   :  { %s133_s10 = smov 120   ;;  %s134_s11 = smov 104   ;;  %vm3_vm0 = vcmask 64512   ;;  %vm9_vm1 = vcmask 1048512   ;;  %vm15_vm2 = vcmask 982912   ;;  %vm21_vm3 = vcmask 917312   ;;  %s209_s0 = inlined_call_operand.vmem [shape: f32[16,8], index: 0, kind: input, shape index: {}]   ;;  %s210_s1 = inlined_call_operand.vmem [shape: f32[1,128], index: 1, kind: output, shape index: {}]  }
   0x1   :  { %v103_v0 = vld [vmem:[%s209_s0 + $0xf] sm:$0x1]   ;;  %v105_v1 = vld [vmem:[%s209_s0 + $0xd] sm:$0x1]   ;;  %v104_v2 = vld [vmem:[%s209_s0 + $0xe] sm:$0x1]  }
   0x2   :  { %7 = vrot.lane.b32.xlu0 %v103_v0, %s133_s10  ;;  %19 = vrot.lane.b32.xlu1 %v105_v1, %s134_s11  ;;  %v106_v3 = vld [vmem:[%s209_s0 + $0xc] sm:$0x1]   ;;  %s135_s16 = smov 112   ;;  %s136_s17 = smov 96   ;;  %v107_v4 = vld [vmem:[%s209_s0 + $0xb] sm:$0x1]  }
   0x3   :  { %v108_v5 = vld [vmem:[%s209_s0 + $0xa] sm:$0x1]   ;;  %v2_v6 = vld [vmem:[%s209_s0] sm:$0x1]   ;;  %s137_s24 = smov 88   ;;  %s138_s25 = smov 80  }
   0x4   :  { %4 = vst.msk [vmem:[#allocation0] sm:$0x1] %vm3_vm0, %v2_v6   ;;  %v109_v7 = vld [vmem:[%s209_s0 + $0x9] sm:$0x1]   ;;  %v110_v8 = vld [vmem:[%s209_s0 + $0x8] sm:$0x1]  }
   0x5   :  { %s139_s30 = smov 72   ;;  %s140_s2 = smov 64   ;;  %v111_v9 = vld [vmem:[%s209_s0 + $0x7] sm:$0x1]   ;;  %v112_v10 = vld [vmem:[%s209_s0 + $0x6] sm:$0x1]  }
   0x6   :  { %13 = vrot.lane.b32.xlu0 %v104_v2, %s135_s16  ;;  %25 = vrot.lane.b32.xlu1 %v106_v3, %s136_s17  ;;  %s141_s7 = smov 56   ;;  %s142_s8 = smov 48   ;;  %v113_v11 = vld [vmem:[%s209_s0 + $0x5] sm:$0x1]   ;;  %v114_v12 = vld [vmem:[%s209_s0 + $0x4] sm:$0x1]  }
   0x7   :  { %s143_s13 = smov 40   ;;  %s144_s14 = smov 32   ;;  %v115_v13 = vld [vmem:[%s209_s0 + $0x3] sm:$0x1]   ;;  %v116_v14 = vld [vmem:[%s209_s0 + $0x2] sm:$0x1]  }
   0x8   :  { %s145_s19 = smov 24   ;;  %s146_s20 = smov 16   ;;  %v117_v15 = vld [vmem:[%s209_s0 + $0x1] sm:$0x1]   ;;  %vm27_vm4 = vcmask 851712   ;;  %vm33_vm5 = vcmask 786112  }
   0x9   :  { %s147_s0 = smov 8   ;;  %vm39_vm6 = vcmask 720512   ;;  %vm45_vm7 = vcmask 654912   ;;  %vm51_vm8 = vcmask 589312   ;;  %vm57_vm9 = vcmask 523712  }
   0xa   :  { %31 = vrot.lane.b32.xlu0 %v107_v4, %s137_s24  ;;  %37 = vrot.lane.b32.xlu1 %v108_v5, %s138_s25  ;;  %vm63_vm10 = vcmask 458112   ;;  %vm69_vm11 = vcmask 392512   ;;  %vm75_vm12 = vcmask 326912   ;;  %vm81_vm13 = vcmask 261312  }
   0xb   :  { %vm87_vm14 = vcmask 195712   ;;  %vm93_vm15 = vcmask 130112  }
   0xe   :  { %43 = vrot.lane.b32.xlu0 %v109_v7, %s139_s30  ;;  %49 = vrot.lane.b32.xlu1 %v110_v8, %s140_s2 }
  0x12   :  { %55 = vrot.lane.b32.xlu0 %v111_v9, %s141_s7  ;;  %61 = vrot.lane.b32.xlu1 %v112_v10, %s142_s8 }
  0x16   :  { %67 = vrot.lane.b32.xlu0 %v113_v11, %s143_s13  ;;  %73 = vrot.lane.b32.xlu1 %v114_v12, %s144_s14 }
  0x1a   :  { %79 = vrot.lane.b32.xlu0 %v115_v13, %s145_s19  ;;  %85 = vrot.lane.b32.xlu1 %v116_v14, %s146_s20 }
  0x1e   :  { %91 = vrot.lane.b32.xlu0 %v117_v15, %s147_s0 }
  0x74   :  { %v8_v16 = vpop.permute.xlu0 %7   ;;  %v20_v17 = vpop.permute.xlu1 %19  }
  0x75   :  { %10 = vst.msk [vmem:[#allocation0] sm:$0x1] %vm9_vm1, %v8_v16  }
  0x78   :  { %v14_v18 = vpop.permute.xlu0 %13   ;;  %v26_v19 = vpop.permute.xlu1 %25  }
  0x79   :  { %16 = vst.msk [vmem:[#allocation0] sm:$0x1] %vm15_vm2, %v14_v18  }
  0x7a   :  { %22 = vst.msk [vmem:[#allocation0] sm:$0x1] %vm21_vm3, %v20_v17  }
  0x7b   :  { %28 = vst.msk [vmem:[#allocation0] sm:$0x1] %vm27_vm4, %v26_v19  }
  0x7c   :  { %v32_v20 = vpop.permute.xlu0 %31   ;;  %v38_v21 = vpop.permute.xlu1 %37  }
  0x7d   :  { %34 = vst.msk [vmem:[#allocation0] sm:$0x1] %vm33_vm5, %v32_v20  }
  0x7e   :  { %40 = vst.msk [vmem:[#allocation0] sm:$0x1] %vm39_vm6, %v38_v21  }
  0x80   :  { %v44_v22 = vpop.permute.xlu0 %43   ;;  %v50_v23 = vpop.permute.xlu1 %49  }
  0x81   :  { %46 = vst.msk [vmem:[#allocation0] sm:$0x1] %vm45_vm7, %v44_v22  }
  0x82   :  { %52 = vst.msk [vmem:[#allocation0] sm:$0x1] %vm51_vm8, %v50_v23  }
  0x84   :  { %v56_v24 = vpop.permute.xlu0 %55   ;;  %v62_v25 = vpop.permute.xlu1 %61  }
  0x85   :  { %58 = vst.msk [vmem:[#allocation0] sm:$0x1] %vm57_vm9, %v56_v24  }
  0x86   :  { %64 = vst.msk [vmem:[#allocation0] sm:$0x1] %vm63_vm10, %v62_v25  }
  0x88   :  { %v68_v26 = vpop.permute.xlu0 %67   ;;  %v74_v27 = vpop.permute.xlu1 %73  }
  0x89   :  { %70 = vst.msk [vmem:[#allocation0] sm:$0x1] %vm69_vm11, %v68_v26  }
  0x8a   :  { %76 = vst.msk [vmem:[#allocation0] sm:$0x1] %vm75_vm12, %v74_v27  }
  0x8c   :  { %v80_v28 = vpop.permute.xlu0 %79   ;;  %v86_v29 = vpop.permute.xlu1 %85  }
  0x8d   :  { %82 = vst.msk [vmem:[#allocation0] sm:$0x1] %vm81_vm13, %v80_v28  }
  0x8e   :  { %88 = vst.msk [vmem:[#allocation0] sm:$0x1] %vm87_vm14, %v86_v29  }
  0x90   :  { %v92_v30 = vpop.permute.xlu0 %91  }
  0x91   :  { %94 = vst.msk [vmem:[#allocation0] sm:$0x1] %vm93_vm15, %v92_v30  }
  0x98   :  { %v99_v31 = vld [vmem:[#allocation0] sm:$0x1] }
  0x99   :  { %102 = vst [vmem:[%s210_s1] sm:$0x1] %v99_v31 }

// kernel: cnn_block_forward.1
= control target key start
LH: loop header
LB: loop body
LE: loop exit
PB: predicated region body
PF: predicated region fallthrough
CT: control target
= control target key end

     0   :  { %s696_s12 = smov 0   ;;  %s792_s0 = inlined_call_operand.vmem [shape: bf16[2,18,72], index: 0, kind: input, shape index: {}]   ;;  %s793_s1 = inlined_call_operand.vmem [shape: bf16[3,72,128], index: 1, kind: input, shape index: {}]   ;;  %s794_s2 = inlined_call_operand.vmem [shape: f32[1,128], index: 2, kind: input, shape index: {}]   ;;  %s795_s3 = inlined_call_operand.vmem [shape: f32[2,16,128], index: 3, kind: output, shape index: {}]  }
   0x1 LB: > { %s528_s13 = sadd.s32 4294967295, %s672_s12   ;;  %p532_p0 = scmp.ge.s32.totalorder %s672_s12, 1  ;;  %s672_s12 = sphi %s696_s12, %s13_s12  }
   0x2   : > { %p137_p1 = scmp.lt.s32.totalorder %s672_s12, 3 }
   0x4   : > { %p138_p2 = pnand %p532_p0, %p137_p1 }
   0x5   : > { %p161_p3 = scmp.lt.s32.totalorder (!%p138_p2), %s528_s13, 1 }
   0x6   : > { %141 = sbr.rel (%p138_p2) target bundleno = 254 (0xfe), region = 32 }
   0xb   : > { %v651_v0 = vld [vmem:[%s793_s1 + $0x44] ss:$0 sps:$4 sm:$0xff]   ;;  %vm252_vm0 = vcmask 1043456   ;;  %v674_v1 = vmov 0.0   ;;  %v652_v2 = vld [vmem:[%s793_s1 + $0x20] ss:$0 sps:$4 sm:$0xff]  }
   0xc   : > { %598 = vmatprep.subr.bf16.mxu0 %v674_v1  ;;  %612 = vmatprep.subr.bf16.mxu1 %v674_v1  ;;  %v254_v3 = vsel %vm252_vm0, %v651_v0, 0  ;;  %v327_v4 = vsel %vm252_vm0, %v652_v2, 0  ;;  %v653_v5 = vld [vmem:[%s793_s1 + $0x3c] sm:$0xff]   ;;  %vm675_vm1 = vmmov 0   ;;  %v655_v7 = vld [vmem:[%s793_s1 + $0x34] sm:$0xff]   ;;  %s797_s13 = smov (!%p161_p3, %s528_s13), 1 }
   0xd   : > { %599 = vmatpush3.bf16.msra.mxu0 %v254_v3  ;;  %613 = vmatpush3.bf16.msra.mxu1 %v327_v4  ;;  %v654_v6 = vld [vmem:[%s793_s1 + $0x18] sm:$0xff]   ;;  %v656_v8 = vld [vmem:[%s793_s1 + $0x10] sm:$0xff]   ;;  %s640_s26 = smul.u32 12, %s797_s13  ;;  %v658_v10 = vld [vmem:[%s793_s1 + $0x8] sm:$0xff]   ;;  %vm248_vm5 = vcmask 588800   ;;  %vm382_vm7 = vcmask 1046528  }
   0xe   : > { %600 = vmatprep.subr.bf16.mxu0 %v674_v1  ;;  %614 = vmatprep.subr.bf16.mxu1 %v674_v1  ;;  %v657_v9 = vld [vmem:[%s793_s1 + $0x2c] sm:$0xff]   ;;  %v659_v16 = vld [vmem:[%s793_s1 + $0x24] sm:$0xff]   ;;  %vm208_vm6 = vsmask.f32 7424  ;;  %v663_v36 = vld [vmem:[%s793_s1 + $0x58] sm:$0xff]   ;;  %s575_s23 = sshll.u32 %s797_s13, 4 }
   0xf   : > { %608 = vmatprep.mubr.msk.bf16.mxu0 %vm675_vm1, %v674_v1  ;;  %622 = vmatprep.mubr.msk.bf16.mxu1 %vm675_vm1, %v674_v1  ;;  %s165_s6 = scalar_lea.vmem %s792_s0, %s640_s26  ;;  %v660_v18 = vld [vmem:[%s793_s1] sm:$0xff]   ;;  %v661_v29 = vld [vmem:[%s793_s1 + $0x68] ss:$0 sps:$4 sm:$0xff]   ;;  %v664_v37 = vld [vmem:[%s793_s1 + $0x50] sm:$0xff]   ;;  %s170_s28 = scalar_lea.vmem %s795_s3, %s575_s23 }
  0x10   : > { %v577_v11 = vld [vmem:[%s165_s6] sm:$0xff]   ;;  %v174_v12 = vld [vmem:[%s165_s6 + $0x8] sm:$0x1]  ;;  %v417_v33 = vsel %vm252_vm0, %v661_v29, 0 }
  0x11   : > { %601 = vmatpush3.bf16.msra.mxu0 %v653_v5  ;;  %615 = vmatpush3.bf16.msra.mxu1 %v654_v6  ;;  %v578_v13 = vunpack.c.l.bf16 %v577_v11  ;;  %v579_v14 = vunpack.c.h.bf16 %v577_v11  ;;  %v177_v15 = vunpack.c.l.bf16 %v174_v12  ;;  %v662_v35 = vld [vmem:[%s793_s1 + $0x60] sm:$0xff]   ;;  %v665_v38 = vld [vmem:[%s793_s1 + $0x48] sm:$0xff]  }
  0x12   : > { %602 = vmatprep.subr.bf16.mxu0 %v674_v1  ;;  %616 = vmatprep.subr.bf16.mxu1 %v674_v1  ;;  %v572_v52 = vld [vmem:[%s794_s2] ss:$0 sm:$0xff] }
  0x13   : > { %vm178_vm2 = vcmp.ge.f32.partialorder %v578_v13, 0.0  ;;  %vm179_vm3 = vcmp.ge.f32.partialorder %v579_v14, 0.0  ;;  %vm180_vm4 = vcmp.ge.f32.partialorder %v177_v15, 0.0  ;;  %v181_v17 = vmul.f32 0.01, %v578_v13 }
  0x14   : > { %v182_v19 = vmul.f32 0.01, %v579_v14  ;;  %v183_v20 = vmul.f32 0.01, %v177_v15 }
  0x15   : > { %603 = vmatpush3.bf16.msra.mxu0 %v655_v7  ;;  %617 = vmatpush3.bf16.msra.mxu1 %v656_v8  ;;  %v184_v21 = vsel %vm178_vm2, %v578_v13, %v181_v17 }
  0x16   : > { %604 = vmatprep.subr.bf16.mxu0 %v674_v1  ;;  %618 = vmatprep.subr.bf16.mxu1 %v674_v1  ;;  %v185_v22 = vsel %vm179_vm3, %v579_v14, %v182_v19  ;;  %v186_v23 = vsel %vm180_vm4, %v177_v15, %v183_v20 }
  0x17   : > { %v187_v24 = vpack.c.bf16 %v185_v22, %v184_v21  ;;  %v197_v25 = vpack.c.bf16 %v186_v23, %v186_v23 }
  0x19   : > { %605 = vmatpush3.bf16.msra.mxu0 %v657_v9  ;;  %619 = vmatpush3.bf16.msra.mxu1 %v658_v10  ;;  %v210_v26 = vshrl.u32 %v187_v24, 16  ;;  %v212_v27 = vshll.u32 %v187_v24, 16  ;;  %v217_v28 = vshll.u32 %v197_v25, 16  ;;  %v383_v39 = vrot.slane %v187_v24, 1 }
  0x1a   : > { %606 = vmatprep.subr.bf16.mxu0 %v674_v1  ;;  %620 = vmatprep.subr.bf16.mxu1 %v674_v1  ;;  %v384_v40 = vrot.slane %v197_v25, 1 }
  0x1b   : > { %v214_v30 = vrot.slane %v212_v27, 1  ;;  %v219_v31 = vrot.slane %v217_v28, 1 }
  0x1c   : > { %v385_v41 = vsel %vm382_vm7, %v383_v39, %v384_v40 }
  0x1d   : > { %607 = vmatpush3.bf16.msra.mxu0 %v659_v16  ;;  %621 = vmatpush3.bf16.msra.mxu1 %v660_v18  ;;  %v215_v32 = vor.u32 %v214_v30, %v210_v26 }
  0x1e   : > { %626 = vmatprep.subr.bf16.mxu0 %v674_v1 }
  0x1f   : > { %v220_v34 = vsel %vm208_vm6, %v215_v32, %v219_v31 }
  0x20   : > { %623 = vmatmul.mubr.msk.bf16.vlgmr.msra.gmra.mxu1 %vm248_vm5, %v187_v24  ;;  %609 = vmatmul.mubr.msk.bf16.vlgmr.msra.gmra.mxu0 %vm248_vm5, %v220_v34 }
  0x21   : > { %627 = vmatpush3.bf16.msra.mxu0 %v417_v33  ;;  %636 = vmatprep.mubr.msk.bf16.mxu0 %vm675_vm1, %v674_v1 }
  0x22   : > { %628 = vmatprep.subr.bf16.mxu0 %v674_v1 }
  0x25   : > { %629 = vmatpush3.bf16.msra.mxu0 %v662_v35 }
  0x26   : > { %630 = vmatprep.subr.bf16.mxu0 %v674_v1 }
  0x29   : > { %631 = vmatpush3.bf16.msra.mxu0 %v663_v36 }
  0x2a   : > { %632 = vmatprep.subr.bf16.mxu0 %v674_v1 }
  0x2d   : > { %633 = vmatpush3.bf16.msra.mxu0 %v664_v37 }
  0x2e   : > { %634 = vmatprep.subr.bf16.mxu0 %v674_v1 }
  0x31   : > { %635 = vmatpush3.bf16.msra.mxu0 %v665_v38 }
  0x34   : > { %637 = vmatmul.mubr.msk.bf16.vlgmr.msra.gmra.mxu0 %vm248_vm5, %v385_v41 }
  0xe0   : > { %v363_v42 = vpop.f32.mrf.mxu1  ;;  %v290_v45 = vpop.f32.mrf.mxu0 }
  0xe1   : > { %v364_v50 = vadd.f32 %v363_v42, %v290_v45 }
  0xe2   : > { %v624_v43 = vpop.f32.mrf.mxu1  ;;  %v610_v47 = vpop.f32.mrf.mxu0 }
  0xe4   : > { %v366_v44 = vpop.f32.mrf.mxu1  ;;  %v293_v48 = vpop.f32.mrf.mxu0 }
  0xe5   : > { %v367_v55 = vadd.f32 %v366_v44, %v293_v48 }
  0xe6   : > { %v625_v46 = vpop.f32.mrf.mxu1  ;;  %v611_v49 = vpop.f32.mrf.mxu0 }
  0xf4   : > { %v453_v51 = vpop.f32.mrf.mxu0 }
  0xf5   : > { %v460_v53 = vadd.f32 %v453_v51, %v364_v50 }
  0xf6   : > { %v638_v54 = vpop.f32.mrf.mxu0 }
  0xf7   : > { %v469_v56 = vadd.f32 %v572_v52, %v460_v53 }
  0xf8   : > { %v456_v57 = vpop.f32.mrf.mxu0 }
  0xf9   : > { %471 = vst [vmem:[%s170_s28] sm:$0xff] %v469_v56  ;;  %v461_v58 = vadd.f32 %v456_v57, %v367_v55 }
  0xfa   : > { %v639_v59 = vpop.f32.mrf.mxu0 }
  0xfb   : > { %v470_v60 = vadd.f32 %v572_v52, %v461_v58 }
  0xfd   : > { %472 = vst [vmem:[%s170_s28 + $0x8] sm:$0xff] %v470_v60 }
  0xfe PF: > { %s13_s12 = sadd.s32 1, %s672_s12  }
  0xff   : > { %p10_p4 = scmp.ge.s32.totalorder %s13_s12, 4  }
 0x101   :  { %12 = sbr.rel (!%p10_p4) target bundleno = 1 (0x1), region = 64 }

</bundles_post_ra>
